<compile_context>
chip_gen: v5e
topology: v5e:2x2
jax: 0.10.0
libtpu: 0.0.40
codegen_flags: <defaults>
</compile_context>

<pallas_src>
import jax
import jax.numpy as jnp
from jax.experimental import pallas as pl
from jax.experimental.pallas import tpu as pltpu

K = 52
N = 52


def _linear_relu_kernel(x_ref, wt_ref, b_ref, o_ref):
    # x_ref: (TM, K), wt_ref: (K, N) (pre-transposed), b_ref: (1, N), o_ref: (TM, N)
    y = jnp.dot(x_ref[...], wt_ref[...], preferred_element_type=jnp.float32)
    y = y + b_ref[...]
    o_ref[...] = jnp.maximum(y, 0.0).astype(o_ref.dtype)


def _round_up(v, m):
    return ((v + m - 1) // m) * m


def linear_relu(x, weight, bias, *, tm=4096):
    """relu(x @ weight.T + bias) with weight in PyTorch layout (N, K)."""
    M = x.shape[0]
    wt = weight.T                    # (K, N) — transpose once, outside the kernel
    bias2d = bias.reshape(1, N)

    # Row tile: multiple of 8 (satisfies the (8,128) rule since N==full last dim),
    # big enough to amortize per-step overhead, but ≥4 grid steps for large M so
    # the "parallel" M axis gives both v7x TensorCores ≥2 pipelined steps each.
    tm_eff = min(tm, max(8, _round_up(pl.cdiv(M, 4), 8)))
    grid_m = pl.cdiv(M, tm_eff)      # partial last block handled by Pallas masking

    out = pl.pallas_call(
        _linear_relu_kernel,
        out_shape=jax.ShapeDtypeStruct((M, N), x.dtype),
        grid=(grid_m,),
        in_specs=[
            pl.BlockSpec((tm_eff, K), lambda i: (i, 0)),   # x tile marches over M
            pl.BlockSpec((K, N), lambda i: (0, 0)),        # weight resident every step
            pl.BlockSpec((1, N), lambda i: (0, 0)),        # bias resident every step
        ],
        out_specs=pl.BlockSpec((tm_eff, N), lambda i: (i, 0)),
        compiler_params=pltpu.CompilerParams(
            dimension_semantics=("parallel",),             # shard M across TCs (v7x)
        ),
    )(x, wt, bias2d)
    return out


def model_forward(x, x2, params):
    # PyTorch forward: tmp = linear(x); tmp = relu(tmp); return tmp
    # (linear2 / relu2 and x2 are dead code after the first return)
    w1, b1 = params["linear"]
    return linear_relu(x, w1, b1)


model_forward_jit = jax.jit(model_forward)
linear_relu_jit = jax.jit(linear_relu)


def init_params(key):
    # nn.Linear-style shapes: weight (N, K), bias (N,)
    k1, k2, k3, k4 = jax.random.split(key, 4)
    bound = 1.0 / (K ** 0.5)
    params = {
        "linear": (
            jax.random.uniform(k1, (N, K), jnp.float32, -bound, bound),
            jax.random.uniform(k2, (N,), jnp.float32, -bound, bound),
        ),
        # linear2 exists in __init__ but is never reached in forward (dead code)
        "linear2": (
            jax.random.uniform(k3, (N, K), jnp.float32, -bound, bound),
            jax.random.uniform(k4, (N,), jnp.float32, -bound, bound),
        ),
    }
    return params


if __name__ == "__main__":
    key = jax.random.PRNGKey(0)
    kp, kx, kx2 = jax.random.split(key, 3)
    params = init_params(kp)

    M = 8  # small batch for the sanity run
    x = jax.random.normal(kx, (M, K), jnp.float32)
    x2 = jax.random.normal(kx2, (M, K), jnp.float32)

    out = model_forward_jit(x, x2, params)
    jax.block_until_ready(out)

    # sanity check against plain JAX reference
    w1, b1 = params["linear"]
    ref = jnp.maximum(x @ w1.T + b1, 0.0)
    assert out.shape == (M, N)
    assert jnp.allclose(out, ref, atol=1e-5, rtol=1e-5)

    # exercise the tiled / partial-last-block path with a non-multiple-of-8 batch
    M2 = 1000
    xb = jax.random.normal(jax.random.PRNGKey(7), (M2, K), jnp.float32)
    outb = linear_relu_jit(xb, w1, b1)
    jax.block_until_ready(outb)
    refb = jnp.maximum(xb @ w1.T + b1, 0.0)
    assert outb.shape == (M2, N)
    assert jnp.allclose(outb, refb, atol=1e-4, rtol=1e-4)

    print("KERNEL_OK")
</pallas_src>

<mosaic_0001>
module attributes {stable_mosaic.version = 11 : i64} {
  func.func @_linear_relu_kernel(%arg0: i32, %arg1: memref<8x52xf32, #tpu.memory_space<vmem>>, %arg2: memref<52x52xf32, #tpu.memory_space<vmem>>, %arg3: memref<1x52xf32, #tpu.memory_space<vmem>>, %arg4: memref<8x52xf32, #tpu.memory_space<vmem>>) attributes {dimension_semantics = [#tpu.dimension_semantics<parallel>], iteration_bounds = array<i64: 1>, scalar_prefetch = 0 : i64, scratch_operands = 0 : i64, tpu.core_type = #tpu.core_type<tc>, window_params = [{transform_indices = @transform_0, window_bounds = array<i64: 8, 52>}, {pipeline_mode = #tpu.pipeline_mode<synchronous>, transform_indices = @transform_1, window_bounds = array<i64: 52, 52>}, {pipeline_mode = #tpu.pipeline_mode<synchronous>, transform_indices = @transform_2, window_bounds = array<i64: 1, 52>}, {transform_indices = @transform_3, window_bounds = array<i64: 8, 52>}]} {
    %c0 = arith.constant 0 : index
    %c0_0 = arith.constant 0 : index
    %0 = vector.load %arg1[%c0, %c0_0] : memref<8x52xf32, #tpu.memory_space<vmem>>, vector<8x52xf32>
    %c0_1 = arith.constant 0 : index
    %c0_2 = arith.constant 0 : index
    %1 = vector.load %arg2[%c0_1, %c0_2] : memref<52x52xf32, #tpu.memory_space<vmem>>, vector<52x52xf32>
    %cst = arith.constant dense<0.000000e+00> : vector<8x52xf32>
    %2 = tpu.matmul %0, %1, %cst {dimension_numbers = #tpu.dot_dimension_numbers<[1], [0], [0], [1], [0, 0, 1, 1], [], []>} : vector<8x52xf32>, vector<52x52xf32>, vector<8x52xf32> -> vector<8x52xf32>
    %c0_3 = arith.constant 0 : index
    %c0_4 = arith.constant 0 : index
    %3 = vector.load %arg3[%c0_3, %c0_4] : memref<1x52xf32, #tpu.memory_space<vmem>>, vector<1x52xf32>
    %4 = vector.broadcast %3 : vector<1x52xf32> to vector<8x52xf32>
    %5 = arith.addf %2, %4 : vector<8x52xf32>
    %cst_5 = arith.constant 0.000000e+00 : f32
    %6 = vector.broadcast %cst_5 : f32 to vector<8x52xf32>
    %7 = arith.maximumf %5, %6 : vector<8x52xf32>
    %c0_6 = arith.constant 0 : index
    %c0_7 = arith.constant 0 : index
    %8 = vector.load %arg4[%c0_6, %c0_7] : memref<8x52xf32, #tpu.memory_space<vmem>>, vector<8x52xf32>
    tpu.vector_store %arg4[%c0_6, %c0_7], %7 {strides = array<i32>} : memref<8x52xf32, #tpu.memory_space<vmem>>, vector<8x52xf32>,
    return
  }
  func.func @transform_0(%arg0: i32) -> (i32, i32) {
    %c0_i32 = arith.constant 0 : i32
    %c0_i32_0 = arith.constant 0 : i32
    return %arg0, %c0_i32 : i32, i32
  }
  func.func @transform_1(%arg0: i32) -> (i32, i32) {
    %c0_i32 = arith.constant 0 : i32
    %c0_i32_0 = arith.constant 0 : i32
    %c0_i32_1 = arith.constant 0 : i32
    return %c0_i32, %c0_i32_0 : i32, i32
  }
  func.func @transform_2(%arg0: i32) -> (i32, i32) {
    %c0_i32 = arith.constant 0 : i32
    %c0_i32_0 = arith.constant 0 : i32
    %c0_i32_1 = arith.constant 0 : i32
    return %c0_i32, %c0_i32_0 : i32, i32
  }
  func.func @transform_3(%arg0: i32) -> (i32, i32) {
    %c0_i32 = arith.constant 0 : i32
    %c0_i32_0 = arith.constant 0 : i32
    return %arg0, %c0_i32 : i32, i32
  }
}

</mosaic_0001>

<bundles_post_ra>
// kernel: model_forward.1
= control target key start
LH: loop header
LB: loop body
LE: loop exit
PB: predicated region body
PF: predicated region fallthrough
CT: control target
= control target key end

     0   :  { %vm31_vm0 = vcmask 1043456   ;;  %s154_s0 = inlined_call_operand.vmem [shape: f32[8,52], index: 0, kind: input, shape index: {}]   ;;  %s155_s1 = inlined_call_operand.vmem [shape: f32[52,52], index: 1, kind: input, shape index: {}]   ;;  %s156_s2 = inlined_call_operand.vmem [shape: f32[1,52], index: 2, kind: input, shape index: {}]   ;;  %s157_s3 = inlined_call_operand.hbm [shape: f32[8,52], index: 3, kind: output, shape index: {}]  }
   0x1   :  { %v22_v0 = vld [vmem:[%s155_s1 + $0x30] sm:$0xf]  ;;  %v21_v1 = vld [vmem:[%s155_s1 + $0x28] sm:$0xff]  ;;  %v20_v2 = vld [vmem:[%s155_s1 + $0x20] sm:$0xff] }
   0x2   :  { %73 = vmatpush.msk.msra.mxu0 %vm31_vm0, %v22_v0 }
   0x4   :  { %45 = vmatpush.msra.mxu0 %v21_v1 }
   0x5   :  { %8 = vsyncpa [#allocation3], 0  ;;  %v19_v3 = vld [vmem:[%s155_s1 + $0x18] sm:$0xff]  ;;  %v18_v4 = vld [vmem:[%s155_s1 + $0x10] sm:$0xff]  ;;  %vm27_vm1 = vcmask 424960   ;;  %s103_s30 = smov [#allocation2]  }
   0x6   :  { %46 = vmatpush.msra.mxu0 %v20_v2  ;;  %v17_v5 = vld [vmem:[%s155_s1 + $0x8] sm:$0xff]  ;;  %v16_v6 = vld [vmem:[%s155_s1] sm:$0xff]  ;;  %s62_s4 = sshll.u32 %s103_s30, 4  ;;  %s64_s7 = sshll.u32 %s157_s3, 4  ;;  %s63_s4 = int_to_ptr.vmem [resolvable:$true] %s62_s4  ;;  %s65_s7 = int_to_ptr.hbm [resolvable:$true] %s64_s7 }
   0x7   :  { %v15_v7 = vld [vmem:[%s154_s0] sm:$0xff] }
   0x8   :  { %47 = vmatpush.msra.mxu0 %v19_v3  ;;  %v76_v8 = vld [vmem:[%s156_s2] ss:$0 sm:$0xff] }
   0xa   :  { %48 = vmatpush.msra.mxu0 %v18_v4 }
   0xc   :  { %49 = vmatpush.msra.mxu0 %v17_v5 }
   0xe   :  { %50 = vmatpush.msra.mxu0 %v16_v6 }
   0xf   :  { %74 = vmatmul.msk.f32.vlgmr.msra.gmra.mxu0 %vm27_vm1, %v15_v7 }
  0x8c   :  { %v52_v9 = vpop.f32.mrf.mxu0 }
  0x8d   :  { %v53_v10 = vadd.f32 %v76_v8, %v52_v9 }
  0x8f   :  { %v55_v11 = vmax.f32 %v53_v10, 0.0 }
  0x91   :  { %56 = vst.msk [vmem:[#allocation2] sm:$0xff] %vm27_vm1, %v55_v11 }
  0x92   :  { %67 = dma.vmem_to_hbm [thread:$0]  %s63_s4, 128, %s65_s7, [#allocation3]  }
  0x93   :  { %101 = dma.done.wait [#allocation3], 128  }
  0x94   :  { %102 = vsyncadd [#allocation3], 4294967168 }
  0x95   :  { %72 = vsyncpa [#allocation3], 1 }

</bundles_post_ra>
